<compile_context>
chip_gen: v6e
topology: v6e:2x2x1
jax: 0.10.0
libtpu: 0.0.40
codegen_flags: <defaults>
</compile_context>

<pallas_src>
import jax
import jax.numpy as jnp
from jax.experimental import pallas as pl
from jax.experimental.pallas import tpu as pltpu


def _round_up(x: int, m: int) -> int:
    return ((x + m - 1) // m) * m


def _tmask_kernel(x_ref, noisy_ref, o_ref):
    # tanh on EUP (its own VLIW slot), multiply on VPU; compute in f32.
    xf = x_ref[...].astype(jnp.float32)
    nf = noisy_ref[...].astype(jnp.float32)
    o_ref[...] = (jnp.tanh(xf) * nf).astype(o_ref.dtype)


_LANES = 128                            # lane-dense last dim (one vreg width)
_TARGET_BLOCK_BYTES = 4 * 1024 * 1024   # ~4 MiB per block per array
_VMEM_LIMIT_BYTES = 40 * 1024 * 1024    # 3 arrays x 2 bufs x 4 MiB = 24 MiB + slack


def tmask(x: jax.Array, noisy: jax.Array) -> jax.Array:
    """Computes tanh(x) * noisy with a Pallas TPU kernel.

    x, noisy: same shape (e.g. NCHW), same dtype.
    """
    assert x.shape == noisy.shape, (x.shape, noisy.shape)
    assert x.dtype == noisy.dtype, (x.dtype, noisy.dtype)

    orig_shape = x.shape
    dtype = x.dtype
    total = 1
    for d in orig_shape:
        total *= d

    itemsize = jnp.dtype(dtype).itemsize
    # Native sublane multiple for this dtype: 8 (f32), 16 (bf16), 32 (int8/fp8).
    sublane = max(8, 32 // max(1, itemsize))

    # Pad only up to a multiple of 128 lanes (rare), and — for tiny arrays —
    # up to at least one native (sublane, 128) tile so the block never exceeds
    # the array's row extent.
    padded_total = _round_up(total, _LANES)
    rows = padded_total // _LANES
    if rows < sublane:
        rows = sublane
        padded_total = rows * _LANES
    pad = padded_total - total

    # Target row tile: ~_TARGET_BLOCK_BYTES per (row_tile, 128) block.
    target_rows = max(
        sublane, _round_up(_TARGET_BLOCK_BYTES // (_LANES * itemsize), sublane)
    )

    if rows <= target_rows:
        # Split into ~2 blocks so grid >= 2 when possible (pipelining + v7x
        # dual-TC sharding).  cdiv(rows, 2*sublane)*sublane <= rows given
        # rows >= sublane, so the block never exceeds the array.
        row_tile = max(sublane, pl.cdiv(rows, 2 * sublane) * sublane)
    else:
        row_tile = target_rows
    grid = (pl.cdiv(rows, row_tile),)

    xf = x.reshape(-1)
    nf = noisy.reshape(-1)
    if pad:
        # tanh(0) * 0 == 0 in the pad region; sliced off below.  Only happens
        # when total % 128 != 0 (or the array is smaller than one tile).
        xf = jnp.pad(xf, (0, pad))
        nf = jnp.pad(nf, (0, pad))
    x2 = xf.reshape(rows, _LANES)
    n2 = nf.reshape(rows, _LANES)

    blk = (row_tile, _LANES)
    index_map = lambda i: (i, 0)

    out2 = pl.pallas_call(
        _tmask_kernel,
        out_shape=jax.ShapeDtypeStruct((rows, _LANES), dtype),
        grid_spec=pltpu.PrefetchScalarGridSpec(
            num_scalar_prefetch=0,
            grid=grid,
            in_specs=[
                pl.BlockSpec(blk, index_map),
                pl.BlockSpec(blk, index_map),
            ],
            out_specs=pl.BlockSpec(blk, index_map),
        ),
        compiler_params=pltpu.CompilerParams(
            dimension_semantics=("parallel",),
            vmem_limit_bytes=_VMEM_LIMIT_BYTES,
        ),
    )(x2, n2)

    out = out2.reshape(-1)
    if pad:
        out = out[:total]
    return out.reshape(orig_shape)


def tmask_ref(x, noisy):
    return jnp.tanh(x) * noisy


if __name__ == "__main__":
    key = jax.random.PRNGKey(0)
    kx, kn = jax.random.split(key)

    # Small NCHW shape consistent with the module's usage (elementwise, so any
    # matching shapes are valid).  rows=16 -> grid=(2,): exercises the >=2-step
    # parallel grid on the small case.
    shape = (2, 4, 16, 16)
    x = jax.random.normal(kx, shape, dtype=jnp.float32)
    noisy = jax.random.normal(kn, shape, dtype=jnp.float32)

    out = jax.block_until_ready(tmask(x, noisy))
    ref = tmask_ref(x, noisy)
    assert out.shape == ref.shape and out.dtype == ref.dtype
    assert jnp.allclose(out, ref, atol=1e-6, rtol=1e-6), "mismatch vs reference"

    # Check 2: 128-aligned total that does NOT divide the row tile -> ragged
    # last block (masked store path), no host-side pad/slice.
    shape2 = (2, 8, 256, 257)
    kx2, kn2 = jax.random.split(kn)
    x2 = jax.random.normal(kx2, shape2, dtype=jnp.float32)
    n2 = jax.random.normal(kn2, shape2, dtype=jnp.float32)
    out2 = jax.block_until_ready(tmask(x2, n2))
    ref2 = tmask_ref(x2, n2)
    assert out2.shape == ref2.shape and out2.dtype == ref2.dtype
    assert jnp.allclose(out2, ref2, atol=1e-6, rtol=1e-6), "mismatch (ragged block)"

    # Check 3: total not divisible by 128 and tiny -> exercises the (rare) pad
    # path and the minimum-tile clamp.
    shape3 = (2, 3, 7, 11)
    kx3, kn3 = jax.random.split(kn2)
    x3 = jax.random.normal(kx3, shape3, dtype=jnp.float32)
    n3 = jax.random.normal(kn3, shape3, dtype=jnp.float32)
    out3 = jax.block_until_ready(tmask(x3, n3))
    ref3 = tmask_ref(x3, n3)
    assert out3.shape == ref3.shape and out3.dtype == ref3.dtype
    assert jnp.allclose(out3, ref3, atol=1e-6, rtol=1e-6), "mismatch (pad path)"

    # Check 4: bf16 inputs (native 16-sublane tile, f32 internal math).
    shape4 = (2, 4, 16, 16)
    x4 = jax.random.normal(kx, shape4, dtype=jnp.bfloat16)
    n4 = jax.random.normal(kn, shape4, dtype=jnp.bfloat16)
    out4 = jax.block_until_ready(tmask(x4, n4))
    ref4 = (jnp.tanh(x4.astype(jnp.float32)) * n4.astype(jnp.float32)).astype(jnp.bfloat16)
    assert out4.shape == ref4.shape and out4.dtype == ref4.dtype
    assert jnp.allclose(
        out4.astype(jnp.float32), ref4.astype(jnp.float32), atol=1e-2, rtol=1e-2
    ), "mismatch (bf16 path)"

    print("KERNEL_OK")
</pallas_src>

<mosaic_0001>
module attributes {stable_mosaic.version = 11 : i64} {
  func.func @_tmask_kernel(%arg0: i32, %arg1: memref<8x128xf32, #tpu.memory_space<vmem>>, %arg2: memref<8x128xf32, #tpu.memory_space<vmem>>, %arg3: memref<8x128xf32, #tpu.memory_space<vmem>>) attributes {dimension_semantics = [#tpu.dimension_semantics<parallel>], iteration_bounds = array<i64: 2>, scalar_prefetch = 0 : i64, scratch_operands = 0 : i64, tpu.core_type = #tpu.core_type<tc>, window_params = [{transform_indices = @transform_0, window_bounds = array<i64: 8, 128>}, {transform_indices = @transform_1, window_bounds = array<i64: 8, 128>}, {transform_indices = @transform_2, window_bounds = array<i64: 8, 128>}]} {
    %c0 = arith.constant 0 : index
    %c0_0 = arith.constant 0 : index
    %0 = vector.load %arg1[%c0, %c0_0] : memref<8x128xf32, #tpu.memory_space<vmem>>, vector<8x128xf32>
    %c0_1 = arith.constant 0 : index
    %c0_2 = arith.constant 0 : index
    %1 = vector.load %arg2[%c0_1, %c0_2] : memref<8x128xf32, #tpu.memory_space<vmem>>, vector<8x128xf32>
    %2 = math.tanh %0 : vector<8x128xf32>
    %3 = arith.mulf %2, %1 : vector<8x128xf32>
    %c0_3 = arith.constant 0 : index
    %c0_4 = arith.constant 0 : index
    %4 = vector.load %arg3[%c0_3, %c0_4] : memref<8x128xf32, #tpu.memory_space<vmem>>, vector<8x128xf32>
    tpu.vector_store %arg3[%c0_3, %c0_4], %3 {strides = array<i32>} : memref<8x128xf32, #tpu.memory_space<vmem>>, vector<8x128xf32>,
    return
  }
  func.func @transform_0(%arg0: i32) -> (i32, i32) {
    %c0_i32 = arith.constant 0 : i32
    %c0_i32_0 = arith.constant 0 : i32
    return %arg0, %c0_i32 : i32, i32
  }
  func.func @transform_1(%arg0: i32) -> (i32, i32) {
    %c0_i32 = arith.constant 0 : i32
    %c0_i32_0 = arith.constant 0 : i32
    return %arg0, %c0_i32 : i32, i32
  }
  func.func @transform_2(%arg0: i32) -> (i32, i32) {
    %c0_i32 = arith.constant 0 : i32
    %c0_i32_0 = arith.constant 0 : i32
    return %arg0, %c0_i32 : i32, i32
  }
}

</mosaic_0001>

<bundles_post_ra>
// kernel: tpu_custom_call.1
= control target key start
LH: loop header
LB: loop body
LE: loop exit
PB: predicated region body
PF: predicated region fallthrough
CT: control target
= control target key end

     0   :  { %7 = vsyncpa [#allocation3], 0  ;;  %s714_s0 = inlined_call_operand.hbm [shape: f32[16,128], index: 0, kind: input, shape index: {}]   ;;  %s715_s1 = inlined_call_operand.hbm [shape: f32[16,128], index: 1, kind: input, shape index: {}]   ;;  %s716_s2 = inlined_call_operand.hbm [shape: f32[16,128], index: 2, kind: output, shape index: {}]  }
   0x1   :  { %9 = vsyncpa [#allocation3 + $0x1], 0 }
   0x2   :  { %10 = vsyncpa [#allocation6], 0 }
   0x3   :  { %12 = vsyncpa [#allocation6 + $0x1], 0 }
   0x4   :  { %13 = vsyncpa [#allocation4], 0 }
   0x5   :  { %15 = vsyncpa [#allocation4 + $0x1], 0  ;;  %s520_s9 = smov 0   ;;  %s522_s10 = smov 0  }
   0x6   :  { %s524_s11 = smov 0   ;;  %s526_s12 = smov 0  }
   0x7 LB: > { %s541_s13 = sadd.s32 4294967295, %s500_s12   ;;  %s308_s14 = sadd.s32 4294967294, %s500_s12   ;;  %s500_s12 = sphi %s526_s12, %s735_s12   ;;  %s496_s11 = sphi %s524_s11, %s734_s11   ;;  %s492_s10 = sphi %s522_s10, %s733_s10   ;;  %s488_s9 = sphi %s520_s9, %s732_s9  }
   0x8   : > { %s545_s15 = sadd.s32 1, %s500_s12   ;;  %s28_s16 = sadd.s32 1, %s496_s11 }
   0x9   : > { %s25_s17 = ssub.s32 %s500_s12, %s545_s15  ;;  %p35_p0 = scmp.ne.s32.totalorder %s496_s11, %s492_s10 }
   0xa   : > { %p26_p1 = scmp.eq.s32.totalorder %s25_s17, 0  ;;  %p36_p2 = scmp.eq.s32.totalorder %s500_s12, 0 }
   0xb   : > { %p41_p3 = scmp.ne.s32.totalorder %s492_s10, %s488_s9  ;;  %p42_p4 = scmp.eq.s32.totalorder %s541_s13, 0 }
   0xc   : > { %s557_s18 = scalar_select %p26_p1, %s496_s11, %s28_s16  }
   0xd   : > { %p559_p5 = por %p36_p2, %p35_p0  ;;  %p563_p6 = por %p42_p4, %p41_p3 }
   0xe   : > { %p91_p7 = scmp.eq.s32.totalorder %s541_s13, 1  ;;  %p97_p8 = scmp.eq.s32.totalorder %s308_s14, 1 }
   0xf   : > { %s720_s20 = scalar_select %p563_p6, 1, 0 }
  0x10   : > { %p340_p10 = scmp.lt.s32.totalorder %s500_s12, 2  ;;  %p570_p11 = por %p91_p7, %p35_p0 }
  0x11   : > { %p574_p12 = por %p97_p8, %p41_p3  ;;  %s579_s23 = sand.u32 1, %s496_s11  }
  0x12   : > { %s721_s21 = scalar_select %p570_p11, 1, 0 }
  0x13   : > { %s722_s22 = scalar_select %p574_p12, 1, 0 }
  0x14   : > { %s312_s24 = sshll.u32 %s500_s12, 7  ;;  %s311_s25 = sshll.u32 %s579_s23, 3 }
  0x15   : > { %s588_s28 = scalar_lea.hbm %s714_s0, %s312_s24  ;;  %s121_s29 = scalar_lea.vmem [#allocation2], %s311_s25 }
  0x16   : > { %s128_s30 = sshll.u32 %s121_s29, 4  ;;  %p594_p13 = pnand %p340_p10, %p559_p5  ;;  %s598_s30 = int_to_ptr.vmem [resolvable:$true] %s128_s30 }
  0x17   : > { %s118_s4 = scalar_lea.sflag [#allocation3], %s579_s23  ;;  %s376_s5 = scalar_lea.hbm %s588_s28, 128 }
  0x18   : > { %p377_p2 = scmp.ne.s32.totalorder %s588_s28, %s376_s5  ;;  %p378_p3 = pneg %p594_p13 }
  0x19   : > { %s381_s8 = scalar_lea.hbm %s714_s0, 256  ;;  %p382_p5 = scmp.lt.s32.totalorder %s588_s28, %s714_s0 }
  0x1a   : > { %p379_p4 = pnand %p378_p3, %p377_p2  ;;  %p383_p8 = scmp.lt.s32.totalorder %s381_s8, %s376_s5 }
  0x1c   : > { %p380_p7 = pneg %p379_p4  ;;  %p384_p10 = por %p383_p8, %p382_p5 }
  0x1e   : > { %p385_p9 = pnand %p384_p10, %p380_p7 }
  0x20   : > { %388 = shalt.err (!%p385_p9)
}
  0x21   : > { %s389_s17 = scalar_lea.vmem %s598_s30, 128  ;;  %s502_s19 = smov [#allocation2]  }
  0x22   : > { %p390_p0 = scmp.ne.s32.totalorder %s598_s30, %s389_s17  ;;  %s394_s26 = sshll.u32 %s502_s19, 4  ;;  %s395_s26 = int_to_ptr.vmem [resolvable:$false] %s394_s26 }
  0x23   : > { %s396_s27 = scalar_lea.vmem %s395_s26, 256  ;;  %p397_p1 = scmp.lt.s32.totalorder %s598_s30, %s395_s26 }
  0x24   : > { %p392_p2 = pnand %p390_p0, %p378_p3  ;;  %p398_p12 = scmp.lt.s32.totalorder %s396_s27, %s389_s17 }
  0x26   : > { %p393_p4 = pneg %p392_p2  ;;  %p399_p11 = por %p398_p12, %p397_p1 }
  0x28   : > { %p400_p5 = pnand %p399_p11, %p393_p4 }
  0x2a   : > { %403 = shalt.err (!%p400_p5)
}
  0x2b   : > { %332 = dma.hbm_to_vmem [thread:$0]  (!%p594_p13), %s588_s28, 128, %s598_s30, %s118_s4  }
  0x2c   : > { %p724_p9 = scmp.lt.s32.totalorder %s500_s12, 3  ;;  %p725_p0 = scmp.ge.s32.totalorder %s500_s12, 1 }
  0x2d   : > { %s640_s7 = scalar_lea.hbm %s715_s1, %s312_s24  ;;  %s139_s8 = scalar_lea.vmem [#allocation5], %s311_s25 }
  0x2e   : > { %p631_p7 = pnand %p725_p0, %p724_p9  ;;  %s146_s14 = sshll.u32 %s139_s8, 4  ;;  %s147_s14 = int_to_ptr.vmem [resolvable:$true] %s146_s14 }
  0x2f   : > { %s136_s28 = scalar_lea.sflag [#allocation6], %s579_s23  ;;  %s404_s30 = scalar_lea.hbm %s640_s7, 128 }
  0x30   : > { %s726_s29 = scalar_select %p631_p7, 1, 0 }
  0x31   : > { %p405_p11 = scmp.ne.s32.totalorder %s640_s7, %s404_s30  ;;  %s409_s17 = scalar_lea.hbm %s715_s1, 256 }
  0x32   : > { %p410_p8 = scmp.lt.s32.totalorder %s640_s7, %s715_s1  ;;  %p411_p10 = scmp.lt.s32.totalorder %s409_s17, %s404_s30 }
  0x33   : > { %p407_p12 = pnand %p405_p11, %p378_p3 }
  0x34   : > { %p412_p2 = por %p411_p10, %p410_p8 }
  0x35   : > { %p408_p1 = pneg %p407_p12 }
  0x37   : > { %p413_p4 = pnand %p412_p2, %p408_p1 }
  0x39   : > { %416 = shalt.err (!%p413_p4)
}
  0x3a   : > { %s417_s25 = scalar_lea.vmem %s147_s14, 128  ;;  %s503_s23 = smov [#allocation5]  }
  0x3b   : > { %p418_p5 = scmp.ne.s32.totalorder %s147_s14, %s417_s25  ;;  %s422_s26 = sshll.u32 %s503_s23, 4  ;;  %s423_s26 = int_to_ptr.vmem [resolvable:$false] %s422_s26 }
  0x3c   : > { %s424_s27 = scalar_lea.vmem %s423_s26, 256  ;;  %p425_p11 = scmp.lt.s32.totalorder %s147_s14, %s423_s26 }
  0x3d   : > { %p420_p9 = pnand %p418_p5, %p378_p3  ;;  %p426_p12 = scmp.lt.s32.totalorder %s424_s27, %s417_s25 }
  0x3f   : > { %p421_p0 = pneg %p420_p9  ;;  %p427_p6 = por %p426_p12, %p425_p11 }
  0x41   : > { %p428_p7 = pnand %p427_p6, %p421_p0 }
  0x43   : > { %431 = shalt.err (!%p428_p7)
}
  0x44   : > { %335 = dma.hbm_to_vmem [thread:$0]  (!%p594_p13), %s640_s7, 128, %s147_s14, %s136_s28  }
  0x45   : > { %p727_p1 = scmp.ne.s32.totalorder %s726_s29, 0 }
  0x46   : > { %s666_s5 = sand.u32 (!%p727_p1), 1, %s492_s10   ;;  %p728_p3 = scmp.ne.s32.totalorder (!%p727_p1), %s720_s20, 0 }
  0x47   : > { %155 = sbr.rel (%p727_p1) target bundleno = 109 (0x6d), region = 28  ;;  %s316_s6 = sshll.u32 (!%p727_p1), %s666_s5, 3 }
  0x48   : > { %s158_s8 = scalar_lea.sflag (!%p727_p1), [#allocation3], %s666_s5  ;;  %s161_s30 = scalar_lea.vmem (!%p727_p1), [#allocation2], %s316_s6 }
  0x4c   : > { %475 = dma.done.wait (%p728_p3), %s158_s8, 128  }
  0x4d   : > { %477 = vsyncadd (%p728_p3), %s158_s8, 4294967168  ;;  %s167_s3 = scalar_lea.sflag [#allocation6], %s666_s5  ;;  %s170_s7 = scalar_lea.vmem [#allocation5], %s316_s6 }
  0x4e   : > { %479 = dma.done.wait (%p728_p3), %s167_s3, 128  }
  0x4f   : > { %481 = vsyncadd (%p728_p3), %s167_s3, 4294967168  ;;  %v196_v0 = vld [vmem:[%s161_s30] sm:$0xff]  ;;  %v197_v1 = vld [vmem:[%s170_s7] sm:$0xff]  ;;  %s195_s29 = scalar_lea.vmem [#allocation7], %s316_s6  ;;  %s320_s28 = sshll.u32 %s541_s13, 7 }
  0x50   : > { %374 = vtanh.f32 %v196_v0  ;;  %s215_s14 = sshll.u32 %s195_s29, 4  ;;  %s213_s17 = scalar_lea.hbm %s716_s2, %s320_s28  ;;  %s216_s14 = int_to_ptr.vmem [resolvable:$true] %s215_s14 }
  0x51   : > { %s202_s24 = scalar_lea.sflag [#allocation4], %s666_s5  ;;  %s432_s20 = scalar_lea.vmem %s216_s14, 128 }
  0x52   : > { %p433_p6 = scmp.ne.s32.totalorder %s216_s14, %s432_s20  ;;  %p729_p13 = scmp.ne.s32.totalorder %s721_s21, 0 }
  0x53   : > { %s504_s19 = smov [#allocation7]  }
  0x54   : > { %p434_p7 = pnand %p433_p6, %p729_p13  ;;  %s436_s25 = sshll.u32 %s504_s19, 4  ;;  %s437_s25 = int_to_ptr.vmem [resolvable:$false] %s436_s25 }
  0x55   : > { %s438_s23 = scalar_lea.vmem %s437_s25, 256  ;;  %p439_p10 = scmp.lt.s32.totalorder %s216_s14, %s437_s25 }
  0x56   : > { %p435_p8 = pneg %p434_p7  ;;  %p440_p2 = scmp.lt.s32.totalorder %s438_s23, %s432_s20 }
  0x58   : > { %p441_p4 = por %p440_p2, %p439_p10 }
  0x5a   : > { %p442_p5 = pnand %p441_p4, %p435_p8 }
  0x5d   : > { %v375_v2 = vpop.eup %374 }
  0x5e   : > { %v199_v3 = vmul.f32 %v375_v2, %v197_v1 }
  0x60   : > { %200 = vst [vmem:[%s195_s29] sm:$0xff] %v199_v3 }
  0x61   : > { %445 = shalt.err (!%p442_p5)
}
  0x62   : > { %s446_s13 = scalar_lea.hbm %s213_s17, 128  ;;  %s450_s5 = scalar_lea.hbm %s716_s2, 256 }
  0x63   : > { %p447_p9 = scmp.ne.s32.totalorder %s213_s17, %s446_s13  ;;  %p451_p12 = scmp.lt.s32.totalorder %s213_s17, %s716_s2 }
  0x64   : > { %p452_p1 = scmp.lt.s32.totalorder %s450_s5, %s446_s13 }
  0x65   : > { %p448_p0 = pnand %p447_p9, %p729_p13 }
  0x66   : > { %p453_p3 = por %p452_p1, %p451_p12 }
  0x67   : > { %p449_p11 = pneg %p448_p0 }
  0x69   : > { %p454_p6 = pnand %p453_p3, %p449_p11 }
  0x6b   : > { %457 = shalt.err (!%p454_p6)
}
  0x6c   : > { %327 = dma.vmem_to_hbm [thread:$0]  (%p729_p13), %s216_s14, 128, %s213_s17, %s202_s24  }
  0x6d PF: > { %s227_s30 = sand.u32 1, %s488_s9   ;;  %p730_p7 = scmp.ne.s32.totalorder %s722_s22, 0 }
  0x6e   : > { %p731_p8 = scmp.ge.s32.totalorder %s500_s12, 2  ;;  %s228_s3 = scalar_lea.sflag [#allocation4], %s227_s30 }
  0x70   : > { %p337_p10 = pnand %p731_p8, %p730_p7 }
  0x72   : > { %p338_p2 = pneg %p337_p10 }
  0x74   : > { %483 = dma.done.wait (%p338_p2), %s228_s3, 128  }
  0x75   : > { %485 = vsyncadd (%p338_p2), %s228_s3, 4294967168  ;;  %p18_p4 = scmp.ge.s32.totalorder %s545_s15, 4   ;;  %s732_s9 = smov %s492_s10 }
  0x76   : > { %s733_s10 = smov %s496_s11  ;;  %s734_s11 = smov %s557_s18 }
  0x77   : > { %s735_s12 = smov %s545_s15  ;;  %20 = sbr.rel (!%p18_p4) target bundleno = 7 (0x7), region = 86 }
  0x7c   :  { %233 = vsyncpa [#allocation3], 1 }
  0x7d   :  { %235 = vsyncpa [#allocation3 + $0x1], 1 }
  0x7e   :  { %236 = vsyncpa [#allocation6], 1 }
  0x7f   :  { %238 = vsyncpa [#allocation6 + $0x1], 1 }
  0x80   :  { %239 = vsyncpa [#allocation4], 1 }
  0x81   :  { %241 = vsyncpa [#allocation4 + $0x1], 1 }

</bundles_post_ra>
